<compile_context>
chip_gen: v6e
topology: v6e:2x2x1
jax: 0.10.0
libtpu: 0.0.40
codegen_flags: <defaults>
</compile_context>

<pallas_src>
import functools

import jax
import jax.numpy as jnp
from jax import lax
from jax.experimental import pallas as pl
from jax.experimental.pallas import tpu as pltpu


_SQRT_2_OVER_PI = 0.7978845608028654
_INV_SQRT2 = 0.7071067811865476


def _conv_ln_act_kernel(xp_ref, w_ref, b_ref, g_ref, bt_ref, o_ref, *,
                        K, S, TT, eps, activation):
    """One batch-row grid step, channel-major.

    xp_ref: (1, S, C_in, Lp)  stride-phase input window   (VMEM, pipelined)
    w_ref : (K, C_out, C_in)  conv weight per tap         (VMEM, resident)
    b_ref : (C_out, 1)        conv bias                   (VMEM, resident)
    g_ref : (C_out, 1)        LayerNorm gamma             (VMEM, resident)
    bt_ref: (C_out, 1)        LayerNorm beta              (VMEM, resident)
    o_ref : (1, C_out, TT)    output tile (NCT layout)    (VMEM, pipelined)
    """
    C_out = w_ref.shape[1]

    # Conv as K accumulating MXU matmuls.  xp_ref[0, r, i, u] = x[i, u*S + r],
    # so for tap k = q*S + r the slab xp_ref[0, r, :, q:q+TT] is x[i, t*S + k].
    acc = jnp.zeros((C_out, TT), jnp.float32)
    for k in range(K):
        q, r = divmod(k, S)
        slab = xp_ref[0, r, :, pl.ds(q, TT)]                      # (C_in, TT)
        acc = acc + jnp.dot(w_ref[k], slab,
                            preferred_element_type=jnp.float32)   # (C_out, TT)
    y = acc + b_ref[...]                                          # bias over channels

    # LayerNorm over channels (axis 0), elementwise affine.
    mu = jnp.mean(y, axis=0, keepdims=True)                       # (1, TT)
    yc = y - mu
    var = jnp.mean(yc * yc, axis=0, keepdims=True)
    yn = yc * lax.rsqrt(var + eps)
    yn = yn * g_ref[...] + bt_ref[...]

    # Activation (HF feat_extract_activation).
    if activation == "gelu":            # exact, erf-based (HF default)
        act = 0.5 * yn * (1.0 + lax.erf(yn * _INV_SQRT2))
    else:                               # "gelu_new": tanh approximation
        act = 0.5 * yn * (1.0 + jnp.tanh(
            _SQRT_2_OVER_PI * (yn + 0.044715 * yn * yn * yn)))

    # Already (C_out, TT): lane-dense store directly in NCT layout.
    o_ref[0] = act.astype(o_ref.dtype)


def conformer_layer_norm_conv_layer(hidden_states, conv_weight, conv_bias,
                                    ln_gamma, ln_beta, *, stride, eps=1e-5,
                                    activation="gelu"):
    """hidden_states: (B, C_in, T); conv_weight: (C_out, C_in, K); others: (C_out,)."""
    assert activation in ("gelu", "gelu_new"), activation
    B, C_in, T = hidden_states.shape
    C_out, in_ch, K = conv_weight.shape
    assert in_ch == C_in and T >= K
    S = int(stride)

    T_out = (T - K) // S + 1                      # Conv1d, padding=0, dilation=1
    # One lane-dense time tile per batch row (multiple of 128 lanes).
    T_out_pad = pl.cdiv(T_out, 128) * 128
    TT = T_out_pad
    Qmax = (K - 1) // S                           # max whole-stride shift of any tap
    Lp = TT + Qmax                                # phase-time axis length
    T_need = Lp * S

    # --- single cheap layout pass (no per-tile window gather) ----------------
    if T_need > T:
        x_adj = jnp.pad(hidden_states, ((0, 0), (0, 0), (0, T_need - T)))
    else:
        x_adj = hidden_states[:, :, :T_need]
    # stride-phase split: x_ph[b, r, i, u] = x[b, i, u*S + r]
    x_ph = x_adj.reshape(B, C_in, Lp, S).transpose(0, 3, 1, 2)    # (B, S, C_in, Lp)

    # conv weight -> (K, C_out, C_in): one (C_out, C_in) block per tap.
    w = conv_weight.transpose(2, 0, 1)
    b2 = conv_bias.reshape(C_out, 1)
    g2 = ln_gamma.reshape(C_out, 1)
    bt2 = ln_beta.reshape(C_out, 1)

    kernel = functools.partial(_conv_ln_act_kernel, K=K, S=S, TT=TT,
                               eps=eps, activation=activation)

    # Real HBM traffic: input read once, output written once, resident params.
    flops = 2 * B * TT * K * C_in * C_out
    bytes_accessed = 4 * (x_ph.size + w.size + 3 * C_out + B * C_out * TT)

    out = pl.pallas_call(
        kernel,
        out_shape=jax.ShapeDtypeStruct((B, C_out, TT), jnp.float32),
        grid_spec=pltpu.PrefetchScalarGridSpec(
            num_scalar_prefetch=0,
            grid=(B,),
            in_specs=[
                pl.BlockSpec((1, S, C_in, Lp), lambda b: (b, 0, 0, 0)),
                pl.BlockSpec((K, C_out, C_in), lambda b: (0, 0, 0)),
                pl.BlockSpec((C_out, 1), lambda b: (0, 0)),
                pl.BlockSpec((C_out, 1), lambda b: (0, 0)),
                pl.BlockSpec((C_out, 1), lambda b: (0, 0)),
            ],
            out_specs=pl.BlockSpec((1, C_out, TT), lambda b: (b, 0, 0)),
        ),
        compiler_params=pltpu.CompilerParams(
            dimension_semantics=("parallel",),
            vmem_limit_bytes=32 * 1024 * 1024,   # tiny per-step footprint; fits v7x's 64 MiB easily
        ),
        cost_estimate=pl.CostEstimate(
            flops=flops,
            transcendentals=B * TT * C_out,
            bytes_accessed=bytes_accessed,
        ),
    )(x_ph, w, b2, g2, bt2)

    return out[:, :, :T_out]


def _reference(x, weight, bias, gamma, beta, *, stride, eps=1e-5, activation="gelu"):
    """Pure-JAX reference: Conv1d + LayerNorm(channels) + GELU."""
    y = lax.conv_general_dilated(
        x, weight, window_strides=(stride,), padding=[(0, 0)],
        dimension_numbers=("NCH", "OIH", "NCH"),
        precision=lax.Precision.HIGHEST,
    ) + bias[None, :, None]
    yt = jnp.transpose(y, (0, 2, 1))                              # (B, T_out, C_out)
    mu = jnp.mean(yt, axis=-1, keepdims=True)
    var = jnp.mean((yt - mu) ** 2, axis=-1, keepdims=True)
    yn = (yt - mu) * lax.rsqrt(var + eps) * gamma + beta
    yn = jnp.transpose(yn, (0, 2, 1))                             # (B, C_out, T_out)
    if activation == "gelu":
        return 0.5 * yn * (1.0 + lax.erf(yn * _INV_SQRT2))
    return 0.5 * yn * (1.0 + jnp.tanh(_SQRT_2_OVER_PI * (yn + 0.044715 * yn ** 3)))


if __name__ == "__main__":
    # config: conv_dim -> 32, conv_kernel=3, conv_stride=2, conv_bias=True,
    #         feat_extract_activation="gelu" (HF Wav2Vec2-Conformer default).
    B, C_in, C_out, T = 2, 32, 32, 513
    K, S = 3, 2

    key = jax.random.PRNGKey(0)
    k_x, k_w, k_b, k_g, k_be = jax.random.split(key, 5)
    hidden_states = jax.random.normal(k_x, (B, C_in, T), dtype=jnp.float32)
    fan_in = C_in * K
    bound = 1.0 / (fan_in ** 0.5)
    conv_weight = jax.random.uniform(k_w, (C_out, C_in, K), jnp.float32, -bound, bound)
    conv_bias = jax.random.uniform(k_b, (C_out,), jnp.float32, -bound, bound)
    ln_gamma = 1.0 + 0.1 * jax.random.normal(k_g, (C_out,), jnp.float32)
    ln_beta = 0.1 * jax.random.normal(k_be, (C_out,), jnp.float32)

    out = conformer_layer_norm_conv_layer(
        hidden_states, conv_weight, conv_bias, ln_gamma, ln_beta,
        stride=S, activation="gelu")
    out = jax.block_until_ready(out)

    ref = _reference(hidden_states, conv_weight, conv_bias, ln_gamma, ln_beta,
                     stride=S, activation="gelu")
    assert out.shape == ref.shape, (out.shape, ref.shape)
    max_err = float(jnp.max(jnp.abs(out - ref)))
    assert max_err < 1e-4, max_err
    print("KERNEL_OK")
</pallas_src>

<mosaic_0001>
module attributes {stable_mosaic.version = 11 : i64} {
  func.func @_conv_ln_act_kernel(%arg0: i32, %arg1: memref<1x2x32x257xf32, #tpu.memory_space<vmem>>, %arg2: memref<3x32x32xf32, #tpu.memory_space<vmem>>, %arg3: memref<32x1xf32, #tpu.memory_space<vmem>>, %arg4: memref<32x1xf32, #tpu.memory_space<vmem>>, %arg5: memref<32x1xf32, #tpu.memory_space<vmem>>, %arg6: memref<1x32x256xf32, #tpu.memory_space<vmem>>) attributes {dimension_semantics = [#tpu.dimension_semantics<parallel>], iteration_bounds = array<i64: 2>, scalar_prefetch = 0 : i64, scratch_operands = 0 : i64, tpu.core_type = #tpu.core_type<tc>, window_params = [{transform_indices = @transform_0, window_bounds = array<i64: 1, 2, 32, 257>}, {pipeline_mode = #tpu.pipeline_mode<synchronous>, transform_indices = @transform_1, window_bounds = array<i64: 3, 32, 32>}, {pipeline_mode = #tpu.pipeline_mode<synchronous>, transform_indices = @transform_2, window_bounds = array<i64: 32, 1>}, {pipeline_mode = #tpu.pipeline_mode<synchronous>, transform_indices = @transform_3, window_bounds = array<i64: 32, 1>}, {pipeline_mode = #tpu.pipeline_mode<synchronous>, transform_indices = @transform_4, window_bounds = array<i64: 32, 1>}, {transform_indices = @transform_5, window_bounds = array<i64: 1, 32, 256>}]} {
    %cst = arith.constant 0.000000e+00 : f32
    %0 = vector.broadcast %cst : f32 to vector<32x256xf32>
    %c0 = arith.constant 0 : index
    %c0_0 = arith.constant 0 : index
    %c0_1 = arith.constant 0 : index
    %c0_2 = arith.constant 0 : index
    %1 = vector.load %arg1[%c0, %c0_0, %c0_1, %c0_2] : memref<1x2x32x257xf32, #tpu.memory_space<vmem>>, vector<1x1x32x256xf32>
    %2 = vector.shape_cast %1 : vector<1x1x32x256xf32> to vector<32x256xf32>
    %c0_3 = arith.constant 0 : index
    %c0_4 = arith.constant 0 : index
    %c0_5 = arith.constant 0 : index
    %3 = vector.load %arg2[%c0_3, %c0_4, %c0_5] : memref<3x32x32xf32, #tpu.memory_space<vmem>>, vector<1x32x32xf32>
    %4 = vector.shape_cast %3 : vector<1x32x32xf32> to vector<32x32xf32>
    %cst_6 = arith.constant dense<0.000000e+00> : vector<32x256xf32>
    %5 = tpu.matmul %4, %2, %cst_6 {dimension_numbers = #tpu.dot_dimension_numbers<[1], [0], [0], [1], [0, 0, 1, 1], [], []>} : vector<32x32xf32>, vector<32x256xf32>, vector<32x256xf32> -> vector<32x256xf32>
    %6 = arith.addf %0, %5 : vector<32x256xf32>
    %c0_7 = arith.constant 0 : index
    %c1 = arith.constant 1 : index
    %c0_8 = arith.constant 0 : index
    %c0_9 = arith.constant 0 : index
    %7 = vector.load %arg1[%c0_7, %c1, %c0_8, %c0_9] : memref<1x2x32x257xf32, #tpu.memory_space<vmem>>, vector<1x1x32x256xf32>
    %8 = vector.shape_cast %7 : vector<1x1x32x256xf32> to vector<32x256xf32>
    %c1_10 = arith.constant 1 : index
    %c0_11 = arith.constant 0 : index
    %c0_12 = arith.constant 0 : index
    %9 = vector.load %arg2[%c1_10, %c0_11, %c0_12] : memref<3x32x32xf32, #tpu.memory_space<vmem>>, vector<1x32x32xf32>
    %10 = vector.shape_cast %9 : vector<1x32x32xf32> to vector<32x32xf32>
    %cst_13 = arith.constant dense<0.000000e+00> : vector<32x256xf32>
    %11 = tpu.matmul %10, %8, %cst_13 {dimension_numbers = #tpu.dot_dimension_numbers<[1], [0], [0], [1], [0, 0, 1, 1], [], []>} : vector<32x32xf32>, vector<32x256xf32>, vector<32x256xf32> -> vector<32x256xf32>
    %12 = arith.addf %6, %11 : vector<32x256xf32>
    %c0_14 = arith.constant 0 : index
    %c0_15 = arith.constant 0 : index
    %c0_16 = arith.constant 0 : index
    %c1_17 = arith.constant 1 : index
    %13 = vector.load %arg1[%c0_14, %c0_15, %c0_16, %c1_17] : memref<1x2x32x257xf32, #tpu.memory_space<vmem>>, vector<1x1x32x256xf32>
    %14 = vector.shape_cast %13 : vector<1x1x32x256xf32> to vector<32x256xf32>
    %c2 = arith.constant 2 : index
    %c0_18 = arith.constant 0 : index
    %c0_19 = arith.constant 0 : index
    %15 = vector.load %arg2[%c2, %c0_18, %c0_19] : memref<3x32x32xf32, #tpu.memory_space<vmem>>, vector<1x32x32xf32>
    %16 = vector.shape_cast %15 : vector<1x32x32xf32> to vector<32x32xf32>
    %cst_20 = arith.constant dense<0.000000e+00> : vector<32x256xf32>
    %17 = tpu.matmul %16, %14, %cst_20 {dimension_numbers = #tpu.dot_dimension_numbers<[1], [0], [0], [1], [0, 0, 1, 1], [], []>} : vector<32x32xf32>, vector<32x256xf32>, vector<32x256xf32> -> vector<32x256xf32>
    %18 = arith.addf %12, %17 : vector<32x256xf32>
    %c0_21 = arith.constant 0 : index
    %c0_22 = arith.constant 0 : index
    %19 = vector.load %arg3[%c0_21, %c0_22] : memref<32x1xf32, #tpu.memory_space<vmem>>, vector<32x1xf32>
    %20 = vector.broadcast %19 : vector<32x1xf32> to vector<32x256xf32>
    %21 = arith.addf %18, %20 : vector<32x256xf32>
    %cst_23 = arith.constant dense<0.000000e+00> : vector<256xf32>
    %22 = vector.multi_reduction <add>, %21, %cst_23 [0] : vector<32x256xf32> to vector<256xf32>
    %23 = vector.shape_cast %22 : vector<256xf32> to vector<1x256xf32>
    %cst_24 = arith.constant 3.200000e+01 : f32
    %24 = vector.broadcast %cst_24 : f32 to vector<1x256xf32>
    %25 = arith.divf %23, %24 : vector<1x256xf32>
    %26 = vector.broadcast %25 : vector<1x256xf32> to vector<32x256xf32>
    %27 = arith.subf %21, %26 : vector<32x256xf32>
    %28 = arith.mulf %27, %27 : vector<32x256xf32>
    %cst_25 = arith.constant dense<0.000000e+00> : vector<256xf32>
    %29 = vector.multi_reduction <add>, %28, %cst_25 [0] : vector<32x256xf32> to vector<256xf32>
    %30 = vector.shape_cast %29 : vector<256xf32> to vector<1x256xf32>
    %cst_26 = arith.constant 3.200000e+01 : f32
    %31 = vector.broadcast %cst_26 : f32 to vector<1x256xf32>
    %32 = arith.divf %30, %31 : vector<1x256xf32>
    %cst_27 = arith.constant 9.99999974E-6 : f32
    %33 = vector.broadcast %cst_27 : f32 to vector<1x256xf32>
    %34 = arith.addf %32, %33 : vector<1x256xf32>
    %35 = math.rsqrt %34 : vector<1x256xf32>
    %36 = vector.broadcast %35 : vector<1x256xf32> to vector<32x256xf32>
    %37 = arith.mulf %27, %36 : vector<32x256xf32>
    %c0_28 = arith.constant 0 : index
    %c0_29 = arith.constant 0 : index
    %38 = vector.load %arg4[%c0_28, %c0_29] : memref<32x1xf32, #tpu.memory_space<vmem>>, vector<32x1xf32>
    %39 = vector.broadcast %38 : vector<32x1xf32> to vector<32x256xf32>
    %40 = arith.mulf %37, %39 : vector<32x256xf32>
    %c0_30 = arith.constant 0 : index
    %c0_31 = arith.constant 0 : index
    %41 = vector.load %arg5[%c0_30, %c0_31] : memref<32x1xf32, #tpu.memory_space<vmem>>, vector<32x1xf32>
    %42 = vector.broadcast %41 : vector<32x1xf32> to vector<32x256xf32>
    %43 = arith.addf %40, %42 : vector<32x256xf32>
    %cst_32 = arith.constant 5.000000e-01 : f32
    %44 = vector.broadcast %cst_32 : f32 to vector<32x256xf32>
    %45 = arith.mulf %44, %43 : vector<32x256xf32>
    %cst_33 = arith.constant 0.707106769 : f32
    %46 = vector.broadcast %cst_33 : f32 to vector<32x256xf32>
    %47 = arith.mulf %43, %46 : vector<32x256xf32>
    %48 = math.erf %47 : vector<32x256xf32>
    %cst_34 = arith.constant 1.000000e+00 : f32
    %49 = vector.broadcast %cst_34 : f32 to vector<32x256xf32>
    %50 = arith.addf %49, %48 : vector<32x256xf32>
    %51 = arith.mulf %45, %50 : vector<32x256xf32>
    %c0_35 = arith.constant 0 : index
    %c0_36 = arith.constant 0 : index
    %c0_37 = arith.constant 0 : index
    %52 = vector.load %arg6[%c0_35, %c0_36, %c0_37] : memref<1x32x256xf32, #tpu.memory_space<vmem>>, vector<1x32x256xf32>
    %53 = vector.shape_cast %52 : vector<1x32x256xf32> to vector<32x256xf32>
    %54 = vector.shape_cast %51 : vector<32x256xf32> to vector<1x32x256xf32>
    tpu.vector_store %arg6[%c0_35, %c0_36, %c0_37], %54 {strides = array<i32>} : memref<1x32x256xf32, #tpu.memory_space<vmem>>, vector<1x32x256xf32>,
    return
  }
  func.func @transform_0(%arg0: i32) -> (i32, i32, i32, i32) {
    %c0_i32 = arith.constant 0 : i32
    %c0_i32_0 = arith.constant 0 : i32
    %c0_i32_1 = arith.constant 0 : i32
    %c0_i32_2 = arith.constant 0 : i32
    return %arg0, %c0_i32, %c0_i32_0, %c0_i32_1 : i32, i32, i32, i32
  }
  func.func @transform_1(%arg0: i32) -> (i32, i32, i32) {
    %c0_i32 = arith.constant 0 : i32
    %c0_i32_0 = arith.constant 0 : i32
    %c0_i32_1 = arith.constant 0 : i32
    %c0_i32_2 = arith.constant 0 : i32
    return %c0_i32, %c0_i32_0, %c0_i32_1 : i32, i32, i32
  }
  func.func @transform_2(%arg0: i32) -> (i32, i32) {
    %c0_i32 = arith.constant 0 : i32
    %c0_i32_0 = arith.constant 0 : i32
    %c0_i32_1 = arith.constant 0 : i32
    return %c0_i32, %c0_i32_0 : i32, i32
  }
  func.func @transform_3(%arg0: i32) -> (i32, i32) {
    %c0_i32 = arith.constant 0 : i32
    %c0_i32_0 = arith.constant 0 : i32
    %c0_i32_1 = arith.constant 0 : i32
    return %c0_i32, %c0_i32_0 : i32, i32
  }
  func.func @transform_4(%arg0: i32) -> (i32, i32) {
    %c0_i32 = arith.constant 0 : i32
    %c0_i32_0 = arith.constant 0 : i32
    %c0_i32_1 = arith.constant 0 : i32
    return %c0_i32, %c0_i32_0 : i32, i32
  }
  func.func @transform_5(%arg0: i32) -> (i32, i32, i32) {
    %c0_i32 = arith.constant 0 : i32
    %c0_i32_0 = arith.constant 0 : i32
    %c0_i32_1 = arith.constant 0 : i32
    return %arg0, %c0_i32, %c0_i32_0 : i32, i32, i32
  }
}

</mosaic_0001>

<bundles_post_ra>
// kernel: tpu_custom_call.1
= control target key start
LH: loop header
LB: loop body
LE: loop exit
PB: predicated region body
PF: predicated region fallthrough
CT: control target
= control target key end

     0   :  { %10 = vsyncpa [#allocation3], 0  ;;  %s1497_s0 = inlined_call_operand.hbm [shape: f32[2,2,32,257], index: 0, kind: input, shape index: {}]   ;;  %s1498_s1 = inlined_call_operand.vmem [shape: f32[3,32,32], index: 1, kind: input, shape index: {}]   ;;  %s1499_s2 = inlined_call_operand.vmem [shape: f32[32,1], index: 2, kind: input, shape index: {}]   ;;  %s1500_s3 = inlined_call_operand.vmem [shape: f32[32,1], index: 3, kind: input, shape index: {}]   ;;  %s1501_s4 = inlined_call_operand.vmem [shape: f32[32,1], index: 4, kind: input, shape index: {}]   ;;  %s1502_s5 = inlined_call_operand.hbm [shape: f32[2,32,256], index: 5, kind: output, shape index: {}]  }
   0x1   :  { %12 = vsyncpa [#allocation3 + $0x1], 0 }
   0x2   :  { %13 = vsyncpa [#allocation4], 0 }
   0x3   :  { %15 = vsyncpa [#allocation4 + $0x1], 0  ;;  %s1210_s18 = smov 0   ;;  %s1212_s19 = smov 0  }
   0x4   :  { %s1214_s20 = smov 0   ;;  %s1216_s21 = smov 0  }
   0x5 LB: > { %s1231_s22 = sadd.s32 4294967295, %s1169_s21   ;;  %s951_s23 = sadd.s32 4294967294, %s1169_s21   ;;  %s1169_s21 = sphi %s1216_s21, %s1516_s21   ;;  %s1165_s20 = sphi %s1214_s20, %s1515_s20   ;;  %s1161_s19 = sphi %s1212_s19, %s1514_s19   ;;  %s1157_s18 = sphi %s1210_s18, %s1513_s18  }
   0x6   : > { %s1235_s24 = sadd.s32 1, %s1169_s21   ;;  %s28_s25 = sadd.s32 1, %s1165_s20 }
   0x7   : > { %s25_s26 = ssub.s32 %s1169_s21, %s1235_s24  ;;  %p35_p0 = scmp.ne.s32.totalorder %s1165_s20, %s1161_s19 }
   0x8   : > { %p26_p1 = scmp.eq.s32.totalorder %s25_s26, 0  ;;  %p36_p2 = scmp.eq.s32.totalorder %s1169_s21, 0 }
   0x9   : > { %p41_p3 = scmp.ne.s32.totalorder %s1161_s19, %s1157_s18  ;;  %p42_p4 = scmp.eq.s32.totalorder %s1231_s22, 0 }
   0xa   : > { %s1247_s27 = scalar_select %p26_p1, %s1165_s20, %s28_s25  }
   0xb   : > { %p37_p5 = por %p36_p2, %p35_p0  ;;  %p1249_p6 = por %p42_p4, %p41_p3 }
   0xc   : > { %p149_p7 = scmp.eq.s32.totalorder %s1231_s22, 1  ;;  %p155_p8 = scmp.eq.s32.totalorder %s951_s23, 1 }
   0xd   : > { %s1505_s28 = scalar_select %p1249_p6, 1, 0 }
   0xe   : > { %p1014_p10 = scmp.lt.s32.totalorder %s1169_s21, 2  ;;  %p1256_p11 = por %p149_p7, %p35_p0 }
   0xf   : > { %p1260_p12 = por %p155_p8, %p41_p3  ;;  %s187_s6 = sand.u32 1, %s1165_s20  }
  0x10   : > { %s1506_s29 = scalar_select %p1256_p11, 1, 0 }
  0x11   : > { %s1507_s30 = scalar_select %p1260_p12, 1, 0 }
  0x12   : > { %s1000_s7 = smul.u32 3072, %s1169_s21  ;;  %p1271_p13 = pnand %p1014_p10, %p37_p5 }
  0x13   : > { %s999_s8 = smul.u32 192, %s187_s6  ;;  %s1277_s15 = scalar_lea.sflag [#allocation3], %s187_s6 }
  0x14   : > { %s1269_s11 = scalar_lea.hbm %s1497_s0, %s1000_s7  ;;  %p1079_p1 = pneg %p1271_p13 }
  0x15   : > { %s191_s13 = scalar_lea.vmem [#allocation2], %s999_s8  ;;  %s1077_s16 = scalar_lea.hbm %s1269_s11, 3072 }
  0x16   : > { %s198_s14 = sshll.u32 %s191_s13, 4  ;;  %p1078_p0 = scmp.ne.s32.totalorder %s1269_s11, %s1077_s16  ;;  %s1275_s14 = int_to_ptr.vmem [resolvable:$true] %s198_s14 }
  0x17   : > { %s1082_s25 = scalar_lea.hbm %s1497_s0, 6144  ;;  %p1083_p4 = scmp.lt.s32.totalorder %s1269_s11, %s1497_s0 }
  0x18   : > { %p1080_p2 = pnand %p1079_p1, %p1078_p0  ;;  %p1084_p5 = scmp.lt.s32.totalorder %s1082_s25, %s1077_s16 }
  0x1a   : > { %p1081_p3 = pneg %p1080_p2  ;;  %p1085_p7 = por %p1084_p5, %p1083_p4 }
  0x1c   : > { %p1086_p8 = pnand %p1085_p7, %p1081_p3 }
  0x1e   : > { %1089 = shalt.err (!%p1086_p8)
}
  0x1f   : > { %s1090_s6 = scalar_lea.vmem %s1275_s14, 3072  ;;  %s1171_s8 = smov [#allocation2]  }
  0x20   : > { %p1091_p10 = scmp.ne.s32.totalorder %s1275_s14, %s1090_s6  ;;  %s1095_s9 = sshll.u32 %s1171_s8, 4  ;;  %s1096_s9 = int_to_ptr.vmem [resolvable:$false] %s1095_s9 }
  0x21   : > { %s1097_s10 = scalar_lea.vmem %s1096_s9, 6144  ;;  %p1098_p2 = scmp.lt.s32.totalorder %s1275_s14, %s1096_s9 }
  0x22   : > { %p1093_p9 = pnand %p1091_p10, %p1079_p1  ;;  %p1099_p12 = scmp.lt.s32.totalorder %s1097_s10, %s1090_s6 }
  0x24   : > { %p1094_p0 = pneg %p1093_p9  ;;  %p1100_p11 = por %p1099_p12, %p1098_p2 }
  0x26   : > { %p1101_p6 = pnand %p1100_p11, %p1094_p0 }
  0x28   : > { %1104 = shalt.err (!%p1101_p6)
}
  0x29   : > { %s1172_s13 = smov 384   ;;  %s1173_s16 = smov 24  }
  0x2a   : > { %1009 = dma.hbm_to_vmem [thread:$0]  (!%p1271_p13), %s1269_s11, 3072, %s1275_s14, %s1277_s15, %s1172_s13, %s1172_s13, %s1173_s16  }
  0x2b   : > { %p955_p9 = scmp.ge.s32.totalorder %s1169_s21, 1  ;;  %p206_p1 = scmp.lt.s32.totalorder %s1169_s21, 3 }
  0x2d   : > { %p207_p3 = pnand %p955_p9, %p206_p1 }
  0x2e   : > { %s1301_s17 = sand.u32 (!%p207_p3), 1, %s1161_s19   ;;  %p1509_p6 = scmp.ne.s32.totalorder (!%p207_p3), %s1505_s28, 0 }
  0x2f   : > { %210 = sbr.rel (%p207_p3) target bundleno = 505 (0x1f9), region = 40  ;;  %s213_s25 = scalar_lea.sflag (!%p207_p3), [#allocation3], %s1301_s17 }
  0x30   : > { %s1001_s23 = smul.u32 (!%p207_p3), 192, %s1301_s17 }
  0x32   : > { %s1305_s26 = scalar_lea.vmem (!%p207_p3), [#allocation2], %s1001_s23 }
  0x34   : > { %1148 = dma.done.wait (%p1509_p6), %s213_s25, 3072  }
  0x35   : > { %1150 = vsyncadd (%p1509_p6), %s213_s25, 4294964224  ;;  %v1174_v0 = vmov 0.0   ;;  %v482_v1 = vld [vmem:[%s1305_s26 + $0x50] sm:$0xff]  ;;  %v481_v2 = vld [vmem:[%s1305_s26 + $0x48] sm:$0xff]  ;;  %s1175_s11 = smov 127   ;;  %vm269_vm0 = vcmask 261120  }
  0x36   : > { %358 = vmatprep.mubr.f32.mxu1 %v1174_v0  ;;  %346 = vmatprep.mubr.f32.mxu0 %v1174_v0  ;;  %v483_v3 = vld [vmem:[%s1305_s26 + $0x58] sm:$0xff]  ;;  %v964_v5 = vld [vmem:[%s1305_s26 + $0xb0] sm:$0xff]  ;;  %v963_v6 = vld [vmem:[%s1305_s26 + $0xa8] sm:$0xff]  ;;  %v1176_v27 = vmov 0   ;;  %vm525_vm1 = vcmask 1039360   ;;  %s956_s15 = sshll.u32 %s1301_s17, 6 }
  0x37   : > { %521 = vrot.lane.b32.xlu0 %v482_v1, %s1175_s11  ;;  %519 = vrot.lane.b32.xlu1 %v481_v2, %s1175_s11  ;;  %v479_v4 = vld [vmem:[%s1305_s26 + $0x38] sm:$0xff]  ;;  %v480_v8 = vld [vmem:[%s1305_s26 + $0x40] sm:$0xff]  ;;  %s242_s7 = scalar_lea.vmem [#allocation5], %s956_s15  ;;  %s990_s6 = sshll.u32 %s1231_s22, 10 }
  0x38   : > { %v962_v7 = vld [vmem:[%s1305_s26 + $0x98] sm:$0xff]  ;;  %v478_v9 = vld [vmem:[%s1305_s26 + $0x30] sm:$0xff]  ;;  %991 = vmatprep.subr.mxu1 %v964_v5  ;;  %306 = vmatprep.subr.mxu0 %v964_v5  ;;  %v960_v11 = vld [vmem:[%s1305_s26 + $0x80] sm:$0xff]  ;;  %s878_s8 = sshll.u32 %s242_s7, 4  ;;  %s1452_s13 = scalar_lea.hbm %s1502_s5, %s990_s6  ;;  %s1454_s8 = int_to_ptr.vmem [resolvable:$true] %s878_s8 }
  0x39   : > { %995 = vmatpush1.msra.mxu1 %v963_v6  ;;  %v961_v10 = vld [vmem:[%s1305_s26 + $0x90] sm:$0xff]  ;;  %307 = vmatpush1.msra.mxu0 %v963_v6  ;;  %v959_v12 = vld [vmem:[%s1305_s26 + $0x78] sm:$0xff]  ;;  %v477_v13 = vld [vmem:[%s1305_s26 + $0x28] sm:$0xff]  ;;  %s865_s22 = scalar_lea.sflag [#allocation4], %s1301_s17  ;;  %s1105_s16 = scalar_lea.vmem %s1454_s8, 1024 }
  0x3a   : > { %992 = vmatprep.subr.mxu1 %v962_v7  ;;  %308 = vmatprep.subr.mxu0 %v962_v7  ;;  %v476_v14 = vld [vmem:[%s1305_s26 + $0x20] sm:$0xff]  ;;  %v958_v15 = vld [vmem:[%s1305_s26 + $0x68] sm:$0xff]  ;;  %v967_v17 = vld [vmem:[%s1498_s1 + $0x30] sm:$0xff]  ;;  %p1106_p11 = scmp.ne.s32.totalorder %s1454_s8, %s1105_s16  ;;  %p1510_p12 = scmp.ne.s32.totalorder %s1506_s29, 0 }
  0x3b   : > { %523 = vrot.lane.b32.xlu0 %v483_v3, %s1175_s11  ;;  %515 = vrot.lane.b32.xlu1 %v479_v4, %s1175_s11  ;;  %v957_v16 = vld [vmem:[%s1305_s26 + $0x60] sm:$0xff]  ;;  %v475_v18 = vld [vmem:[%s1305_s26 + $0x18] sm:$0xff]  ;;  %s1177_s23 = smov [#allocation5]  }
  0x3c   : > { %996 = vmatpush1.msra.mxu1 %v961_v10  ;;  %309 = vmatpush1.msra.mxu0 %v961_v10  ;;  %v473_v19 = vld [vmem:[%s1305_s26 + $0x8] sm:$0xff]  ;;  %v965_v20 = vld [vmem:[%s1498_s1 + $0x20] sm:$0xff]  ;;  %v474_v21 = vld [vmem:[%s1305_s26 + $0x10] sm:$0xff]  ;;  %p1107_p13 = pnand %p1106_p11, %p1510_p12  ;;  %s1109_s25 = sshll.u32 %s1177_s23, 4  ;;  %s1110_s25 = int_to_ptr.vmem [resolvable:$false] %s1109_s25 }
  0x3d   : > { %993 = vmatprep.subr.mxu1 %v960_v11  ;;  %310 = vmatprep.subr.mxu0 %v960_v11  ;;  %v472_v22 = vld [vmem:[%s1305_s26] sm:$0xff]  ;;  %v968_v23 = vld [vmem:[%s1498_s1 + $0x38] sm:$0xff]  ;;  %v966_v24 = vld [vmem:[%s1498_s1 + $0x28] sm:$0xff]  ;;  %s1111_s26 = scalar_lea.vmem %s1110_s25, 2048  ;;  %p1112_p5 = scmp.lt.s32.totalorder %s1454_s8, %s1110_s25 }
  0x3e   : > { %997 = vmatpush1.msra.mxu1 %v959_v12  ;;  %311 = vmatpush1.msra.mxu0 %v959_v12  ;;  %v251_v25 = vld [vmem:[%s1498_s1] sm:$0xff]  ;;  %v652_v26 = vld [vmem:[%s1499_s2 + $0x8] sm:$0xff]  ;;  %v653_v30 = vld [vmem:[%s1499_s2 + $0x10] sm:$0xff]  ;;  %p1108_p4 = pneg %p1107_p13  ;;  %p1113_p7 = scmp.lt.s32.totalorder %s1111_s26, %s1105_s16 }
  0x3f   : > { %517 = vrot.lane.b32.xlu0 %v480_v8, %s1175_s11  ;;  %513 = vrot.lane.b32.xlu1 %v478_v9, %s1175_s11  ;;  %v651_v28 = vld [vmem:[%s1499_s2] sm:$0xff]  ;;  %v252_v29 = vld [vmem:[%s1498_s1 + $0x8] sm:$0xff] }
  0x40   : > { %994 = vmatprep.subr.mxu1 %v958_v15  ;;  %312 = vmatprep.subr.mxu0 %v958_v15  ;;  %v654_v31 = vld [vmem:[%s1499_s2 + $0x18] sm:$0xff]  ;;  %v253_v32 = vld [vmem:[%s1498_s1 + $0x10] sm:$0xff]  ;;  %v752_v33 = vld [vmem:[%s1500_s3] sm:$0xff]  ;;  %p1114_p8 = por %p1113_p7, %p1112_p5 }
  0x41   : > { %998 = vmatpush1.msra.mxu1 %v957_v16  ;;  %313 = vmatpush1.msra.mxu0 %v957_v16  ;;  %v753_v34 = vld [vmem:[%s1500_s3 + $0x8] sm:$0xff]  ;;  %v254_v35 = vld [vmem:[%s1498_s1 + $0x18] sm:$0xff]  ;;  %v754_v36 = vld [vmem:[%s1500_s3 + $0x10] sm:$0xff] }
  0x42   : > { %971 = vmatmul.mubr.msk.f32.vlgmr.msra.gmra.mxu1 %vm269_vm0, %v967_v17  ;;  %407 = vmatprep.subr.mxu1 %v482_v1  ;;  %v755_v37 = vld [vmem:[%s1500_s3 + $0x18] sm:$0xff]  ;;  %v784_v38 = vld [vmem:[%s1501_s4] sm:$0xff]  ;;  %v785_v39 = vld [vmem:[%s1501_s4 + $0x8] sm:$0xff]  ;;  %p1115_p10 = pnand %p1114_p8, %p1108_p4 }
  0x43   : > { %511 = vrot.lane.b32.xlu1 %v477_v13, %s1175_s11  ;;  %509 = vrot.lane.b32.xlu0 %v476_v14, %s1175_s11  ;;  %v786_v40 = vld [vmem:[%s1501_s4 + $0x10] sm:$0xff]  ;;  %v787_v41 = vld [vmem:[%s1501_s4 + $0x18] sm:$0xff] }
  0x44   : > { %408 = vmatpush1.msra.mxu1 %v481_v2  ;;  %364 = vmatprep.mubr.f32.mxu1 %v1174_v0  ;;  %v977_v62 = vld [vmem:[%s1498_s1 + $0x40] sm:$0xff]  ;;  %v978_v63 = vld [vmem:[%s1498_s1 + $0x48] sm:$0xff]  ;;  %v979_v1 = vld [vmem:[%s1498_s1 + $0x50] sm:$0xff] }
  0x45   : > { %409 = vmatprep.subr.mxu1 %v479_v4  ;;  %969 = vmatmul.mubr.msk.f32.vlgmr.msra.gmra.mxu0 %vm269_vm0, %v965_v20  ;;  %v980_v2 = vld [vmem:[%s1498_s1 + $0x58] sm:$0xff] }
  0x46   : > { %410 = vmatpush1.msra.mxu1 %v478_v9  ;;  %352 = vmatprep.mubr.f32.mxu0 %v1174_v0 }
  0x47   : > { %507 = vrot.lane.b32.xlu0 %v475_v18, %s1175_s11  ;;  %503 = vrot.lane.b32.xlu1 %v473_v19, %s1175_s11 }
  0x48   : > { %972 = vmatmul.mubr.msk.f32.gmra.mxu1 %vm269_vm0, %v968_v23  ;;  %411 = vmatprep.subr.mxu1 %v476_v14 }
  0x49   : > { %412 = vmatpush1.msra.mxu1 %v475_v18  ;;  %447 = vmatprep.mubr.f32.mxu1 %v1174_v0 }
  0x4a   : > { %413 = vmatprep.subr.mxu1 %v473_v19  ;;  %970 = vmatmul.mubr.msk.f32.gmra.mxu0 %vm269_vm0, %v966_v24 }
  0x4b   : > { %505 = vrot.lane.b32.xlu0 %v474_v21, %s1175_s11  ;;  %501 = vrot.lane.b32.xlu1 %v472_v22, %s1175_s11 }
  0x4c   : > { %414 = vmatpush1.msra.mxu1 %v472_v22  ;;  %618 = vmatprep.mubr.f32.mxu0 %v1174_v0 }
  0x4d   : > { %973 = vmatmul.mubr.msk.f32.vlgmr.msra.gmra.mxu1 %vm269_vm0, %v251_v25  ;;  %1056 = vset.pattern.permute.xlu1 %v1176_v27 }
  0x4e   : > { %453 = vmatprep.mubr.f32.mxu1 %v1174_v0  ;;  %1055 = vset.pattern.permute.xlu0 %v1176_v27 }
  0x4f   : > { %662 = vperm.xlu1 %1056, %v652_v26   ;;  %657 = vperm.xlu0 %1055, %v651_v28  }
  0x51   : > { %974 = vmatmul.mubr.msk.f32.gmra.mxu1 %vm269_vm0, %v252_v29 }
  0x52   : > { %459 = vmatprep.mubr.f32.mxu1 %v1174_v0 }
  0x53   : > { %667 = vperm.xlu1 %1056, %v653_v30   ;;  %672 = vperm.xlu0 %1055, %v654_v31  }
  0x55   : > { %975 = vmatmul.mubr.msk.f32.gmra.mxu1 %vm269_vm0, %v253_v32 }
  0x56   : > { %465 = vmatprep.mubr.f32.mxu1 %v1174_v0 }
  0x57   : > { %758 = vperm.xlu1 %1056, %v752_v33   ;;  %763 = vperm.xlu0 %1055, %v753_v34  }
  0x59   : > { %976 = vmatmul.mubr.msk.f32.gmra.mxu1 %vm269_vm0, %v254_v35 }
  0x5b   : > { %768 = vperm.xlu1 %1056, %v754_v36   ;;  %773 = vperm.xlu0 %1055, %v755_v37  }
  0x5f   : > { %790 = vperm.xlu1 %1056, %v784_v38   ;;  %795 = vperm.xlu0 %1055, %v785_v39  }
  0x63   : > { %800 = vperm.xlu1 %1056, %v786_v40   ;;  %805 = vperm.xlu0 %1055, %v787_v41  }
  0xa9   : > { %v522_v42 = vpop.permute.xlu0 %521  ;;  %v520_v43 = vpop.permute.xlu1 %519 }
  0xaa   : > { %v532_v47 = vsel %vm525_vm1, %v520_v43, %v522_v42 }
  0xad   : > { %v524_v44 = vpop.permute.xlu0 %523  ;;  %v516_v45 = vpop.permute.xlu1 %515 }
  0xae   : > { %v533_v46 = vsel %vm525_vm1, %v522_v42, %v524_v44 }
  0xaf   : > { %578 = vmatprep.subr.mxu0 %v533_v46 }
  0xb0   : > { %579 = vmatpush1.msra.mxu0 %v532_v47 }
  0xb1   : > { %v518_v48 = vpop.permute.xlu0 %517  ;;  %v514_v49 = vpop.permute.xlu1 %513 }
  0xb2   : > { %v530_v50 = vsel %vm525_vm1, %v514_v49, %v516_v45  ;;  %v531_v51 = vsel %vm525_vm1, %v516_v45, %v518_v48 }
  0xb3   : > { %580 = vmatprep.subr.mxu0 %v531_v51 }
  0xb4   : > { %581 = vmatpush1.msra.mxu0 %v530_v50 }
  0xb5   : > { %v512_v52 = vpop.permute.xlu1 %511  ;;  %v510_v53 = vpop.permute.xlu0 %509 }
  0xb6   : > { %v529_v54 = vsel %vm525_vm1, %v510_v53, %v512_v52 }
  0xb7   : > { %582 = vmatprep.subr.mxu0 %v529_v54 }
  0xb9   : > { %v508_v55 = vpop.permute.xlu0 %507  ;;  %v504_v56 = vpop.permute.xlu1 %503 }
  0xba   : > { %v528_v57 = vsel %vm525_vm1, %v508_v55, %v510_v53 }
  0xbb   : > { %583 = vmatpush1.msra.mxu0 %v528_v57 }
  0xbd   : > { %v506_v58 = vpop.permute.xlu0 %505  ;;  %v502_v59 = vpop.permute.xlu1 %501 }
  0xbe   : > { %v526_v60 = vsel %vm525_vm1, %v502_v59, %v504_v56  ;;  %v527_v61 = vsel %vm525_vm1, %v504_v56, %v506_v58 }
  0xbf   : > { %584 = vmatprep.subr.mxu0 %v527_v61 }
  0xc0   : > { %585 = vmatpush1.msra.mxu0 %v526_v60 }
  0xc1   : > { %981 = vmatmul.mubr.msk.f32.vlgmr.msra.gmra.mxu0 %vm269_vm0, %v977_v62 }
  0xc2   : > { %624 = vmatprep.mubr.f32.mxu0 %v1174_v0 }
  0xc5   : > { %982 = vmatmul.mubr.msk.f32.gmra.mxu0 %vm269_vm0, %v978_v63 }
  0xc6   : > { %630 = vmatprep.mubr.f32.mxu0 %v1174_v0 }
  0xc9   : > { %983 = vmatmul.mubr.msk.f32.gmra.mxu0 %vm269_vm0, %v979_v1 }
  0xca   : > { %636 = vmatprep.mubr.f32.mxu0 %v1174_v0  ;;  %v663_v19 = vpop.permute.xlu1 %662  ;;  %v658_v30 = vpop.permute.xlu0 %657 }
  0xcd   : > { %984 = vmatmul.mubr.msk.f32.gmra.mxu0 %vm269_vm0, %v980_v2 }
  0xce   : > { %v668_v38 = vpop.permute.xlu1 %667  ;;  %v673_v50 = vpop.permute.xlu0 %672 }
 0x102   : > { %v360_v3 = vpop.f32.mrf.mxu1 }
 0x104   : > { %v362_v4 = vpop.f32.mrf.mxu1 }
 0x105   : > { %v348_v9 = vpop.f32.mrf.mxu0 }
 0x107   : > { %v350_v11 = vpop.f32.mrf.mxu0 }
 0x108   : > { %v366_v5 = vpop.f32.mrf.mxu1 }
 0x10a   : > { %v368_v6 = vpop.f32.mrf.mxu1  ;;  %v354_v13 = vpop.f32.mrf.mxu0 }
 0x10c   : > { %v356_v15 = vpop.f32.mrf.mxu0 }
 0x10d   : > { %v449_v7 = vpop.f32.mrf.mxu1 }
 0x10e   : > { %v450_v21 = vadd.f32 %v449_v7, %v348_v9 }
 0x10f   : > { %v451_v8 = vpop.f32.mrf.mxu1 }
 0x110   : > { %v452_v27 = vadd.f32 %v451_v8, %v350_v11 }
 0x111   : > { %v455_v10 = vpop.f32.mrf.mxu1 }
 0x112   : > { %v456_v18 = vadd.f32 %v455_v10, %v354_v13 }
 0x113   : > { %v457_v12 = vpop.f32.mrf.mxu1 }
 0x114   : > { %v458_v23 = vadd.f32 %v457_v12, %v356_v15 }
 0x115   : > { %v461_v14 = vpop.f32.mrf.mxu1 }
 0x116   : > { %v462_v26 = vadd.f32 %v461_v14, %v360_v3 }
 0x117   : > { %v463_v16 = vpop.f32.mrf.mxu1 }
 0x118   : > { %v464_v32 = vadd.f32 %v463_v16, %v362_v4 }
 0x119   : > { %v467_v22 = vpop.f32.mrf.mxu1 }
 0x11a   : > { %v468_v37 = vadd.f32 %v467_v22, %v366_v5 }
 0x11b   : > { %v469_v33 = vpop.f32.mrf.mxu1 }
 0x11c   : > { %v470_v44 = vadd.f32 %v469_v33, %v368_v6 }
 0x181   : > { %v620_v0 = vpop.f32.mrf.mxu0 }
 0x182   : > { %v643_v28 = vadd.f32 %v620_v0, %v450_v21 }
 0x183   : > { %v622_v17 = vpop.f32.mrf.mxu0 }
 0x184   : > { %v644_v34 = vadd.f32 %v622_v17, %v452_v27  ;;  %v675_v40 = vadd.f32 %v658_v30, %v643_v28 }
 0x185   : > { %v626_v20 = vpop.f32.mrf.mxu0 }
 0x186   : > { %v645_v24 = vadd.f32 %v626_v20, %v456_v18  ;;  %v676_v46 = vadd.f32 %v658_v30, %v644_v34 }
 0x187   : > { %v628_v25 = vpop.f32.mrf.mxu0 }
 0x188   : > { %v646_v29 = vadd.f32 %v628_v25, %v458_v23  ;;  %v677_v35 = vadd.f32 %v663_v19, %v645_v24 }
 0x189   : > { %v632_v31 = vpop.f32.mrf.mxu0 }
 0x18a   : > { %v647_v36 = vadd.f32 %v632_v31, %v462_v26  ;;  %v678_v41 = vadd.f32 %v663_v19, %v646_v29  ;;  %v683_v47 = vadd.f32 %v677_v35, %v675_v40 }
 0x18b   : > { %v634_v39 = vpop.f32.mrf.mxu0 }
 0x18c   : > { %v679_v42 = vadd.f32 %v668_v38, %v647_v36  ;;  %v648_v43 = vadd.f32 %v634_v39, %v464_v32  ;;  %v692_v52 = vadd.f32 %v678_v41, %v676_v46 }
 0x18d   : > { %v638_v45 = vpop.f32.mrf.mxu0 }
 0x18e   : > { %v680_v48 = vadd.f32 %v668_v38, %v648_v43  ;;  %v649_v49 = vadd.f32 %v638_v45, %v468_v37  ;;  %v684_v53 = vadd.f32 %v683_v47, %v679_v42  ;;  %v764_v47 = vpop.permute.xlu0 %763 }
 0x18f   : > { %v640_v51 = vpop.f32.mrf.mxu0 }
 0x190   : > { %v681_v54 = vadd.f32 %v673_v50, %v649_v49  ;;  %v650_v55 = vadd.f32 %v640_v51, %v470_v44  ;;  %v693_v56 = vadd.f32 %v692_v52, %v680_v48 }
 0x192   : > { %v685_v57 = vadd.f32 %v684_v53, %v681_v54  ;;  %v682_v58 = vadd.f32 %v673_v50, %v650_v55  ;;  %v774_v51 = vpop.permute.xlu0 %773 }
 0x194   : > { %v686_v59 = vrot.slane %v685_v57, 4  ;;  %v694_v60 = vadd.f32 %v693_v56, %v682_v58 }
 0x196   : > { %v687_v61 = vadd.f32 %v686_v59, %v685_v57  ;;  %v695_v62 = vrot.slane %v694_v60, 4  ;;  %v796_v53 = vpop.permute.xlu0 %795 }
 0x198   : > { %v688_v63 = vrot.slane %v687_v61, 2  ;;  %v696_v1 = vadd.f32 %v695_v62, %v694_v60 }
 0x19a   : > { %v689_v2 = vadd.f32 %v688_v63, %v687_v61  ;;  %v697_v3 = vrot.slane %v696_v1, 2 }
 0x19c   : > { %v690_v4 = vrot.slane %v689_v2, 1  ;;  %v698_v5 = vadd.f32 %v697_v3, %v696_v1 }
 0x19e   : > { %v691_v6 = vadd.f32 %v690_v4, %v689_v2  ;;  %v699_v7 = vrot.slane %v698_v5, 1  ;;  %v806_v2 = vpop.permute.xlu0 %805 }
 0x1a0   : > { %v702_v8 = vmul.f32 0.03125, %v691_v6  ;;  %v700_v9 = vadd.f32 %v699_v7, %v698_v5 }
 0x1a2   : > { %v704_v10 = vsub.f32 %v675_v40, %v702_v8  ;;  %v706_v11 = vsub.f32 %v677_v35, %v702_v8  ;;  %v708_v12 = vsub.f32 %v679_v42, %v702_v8  ;;  %v703_v13 = vmul.f32 0.03125, %v700_v9 }
 0x1a3   : > { %v710_v14 = vsub.f32 %v681_v54, %v702_v8 }
 0x1a4   : > { %v712_v15 = vmul.f32 %v704_v10, %v704_v10  ;;  %v714_v0 = vmul.f32 %v706_v11, %v706_v11  ;;  %v705_v16 = vsub.f32 %v676_v46, %v703_v13  ;;  %v707_v17 = vsub.f32 %v678_v41, %v703_v13  ;;  %v759_v46 = vpop.permute.xlu1 %758 }
 0x1a5   : > { %v709_v18 = vsub.f32 %v680_v48, %v703_v13  ;;  %v716_v19 = vmul.f32 %v708_v12, %v708_v12  ;;  %v711_v21 = vsub.f32 %v682_v58, %v703_v13  ;;  %v718_v24 = vmul.f32 %v710_v14, %v710_v14 }
 0x1a6   : > { %v720_v20 = vadd.f32 %v714_v0, %v712_v15  ;;  %v713_v22 = vmul.f32 %v705_v16, %v705_v16  ;;  %v715_v23 = vmul.f32 %v707_v17, %v707_v17 }
 0x1a7   : > { %v717_v26 = vmul.f32 %v709_v18, %v709_v18  ;;  %v719_v29 = vmul.f32 %v711_v21, %v711_v21 }
 0x1a8   : > { %v721_v25 = vadd.f32 %v720_v20, %v716_v19  ;;  %v729_v27 = vadd.f32 %v715_v23, %v713_v22  ;;  %v769_v50 = vpop.permute.xlu1 %768 }
 0x1aa   : > { %v722_v28 = vadd.f32 %v721_v25, %v718_v24  ;;  %v730_v30 = vadd.f32 %v729_v27, %v717_v26 }
 0x1ac   : > { %v723_v31 = vrot.slane %v722_v28, 4  ;;  %v731_v32 = vadd.f32 %v730_v30, %v719_v29  ;;  %v791_v52 = vpop.permute.xlu1 %790 }
 0x1ae   : > { %v724_v33 = vadd.f32 %v723_v31, %v722_v28  ;;  %v732_v34 = vrot.slane %v731_v32, 4 }
 0x1b0   : > { %v725_v35 = vrot.slane %v724_v33, 2  ;;  %v733_v36 = vadd.f32 %v732_v34, %v731_v32  ;;  %v801_v1 = vpop.permute.xlu1 %800 }
 0x1b2   : > { %v726_v37 = vadd.f32 %v725_v35, %v724_v33  ;;  %v734_v38 = vrot.slane %v733_v36, 2 }
 0x1b4   : > { %v727_v39 = vrot.slane %v726_v37, 1  ;;  %v735_v40 = vadd.f32 %v734_v38, %v733_v36 }
 0x1b6   : > { %v728_v41 = vadd.f32 %v727_v39, %v726_v37  ;;  %v736_v42 = vrot.slane %v735_v40, 1 }
 0x1b8   : > { %v738_v43 = vmul.f32 0.03125, %v728_v41  ;;  %v737_v44 = vadd.f32 %v736_v42, %v735_v40 }
 0x1ba   : > { %v740_v45 = vadd.f32 1e-05, %v738_v43  ;;  %v739_v48 = vmul.f32 0.03125, %v737_v44 }
 0x1bc   : > { %1057 = vrsqrt.f32 %v740_v45  ;;  %v741_v49 = vadd.f32 1e-05, %v739_v48 }
 0x1be   : > { %1059 = vrsqrt.f32 %v741_v49 }
 0x1c9   : > { %v1058_v54 = vpop.eup %1057 }
 0x1ca   : > { %v744_v55 = vmul.f32 %v1058_v54, %v704_v10  ;;  %v746_v56 = vmul.f32 %v1058_v54, %v706_v11  ;;  %v748_v57 = vmul.f32 %v1058_v54, %v708_v12  ;;  %v750_v58 = vmul.f32 %v1058_v54, %v710_v14 }
 0x1cb   : > { %v1060_v59 = vpop.eup %1059 }
 0x1cc   : > { %v776_v60 = vmul.f32 %v759_v46, %v744_v55  ;;  %v778_v61 = vmul.f32 %v764_v47, %v746_v56  ;;  %v780_v62 = vmul.f32 %v769_v50, %v748_v57  ;;  %v782_v63 = vmul.f32 %v774_v51, %v750_v58 }
 0x1cd   : > { %v745_v3 = vmul.f32 %v1060_v59, %v705_v16  ;;  %v747_v4 = vmul.f32 %v1060_v59, %v707_v17  ;;  %v749_v5 = vmul.f32 %v1060_v59, %v709_v18  ;;  %v751_v6 = vmul.f32 %v1060_v59, %v711_v21 }
 0x1ce   : > { %v808_v7 = vadd.f32 %v791_v52, %v776_v60  ;;  %v810_v8 = vadd.f32 %v796_v53, %v778_v61  ;;  %v812_v9 = vadd.f32 %v801_v1, %v780_v62  ;;  %v814_v13 = vadd.f32 %v806_v2, %v782_v63 }
 0x1cf   : > { %v777_v15 = vmul.f32 %v759_v46, %v745_v3  ;;  %v779_v10 = vmul.f32 %v764_v47, %v747_v4  ;;  %v781_v11 = vmul.f32 %v769_v50, %v749_v5  ;;  %v783_v12 = vmul.f32 %v774_v51, %v751_v6 }
 0x1d0   : > { %v824_v14 = vmul.f32 0.70710677, %v808_v7  ;;  %v826_v0 = vmul.f32 0.70710677, %v810_v8  ;;  %v828_v19 = vmul.f32 0.70710677, %v812_v9 }
 0x1d1   : > { %v809_v20 = vadd.f32 %v791_v52, %v777_v15  ;;  %v830_v22 = vmul.f32 0.70710677, %v814_v13  ;;  %v811_v23 = vadd.f32 %v796_v53, %v779_v10  ;;  %v813_v16 = vadd.f32 %v801_v1, %v781_v11 }
 0x1d2   : > { %1061 = verf.f32 %v824_v14  ;;  %v815_v17 = vadd.f32 %v806_v2, %v783_v12  ;;  %v816_v28 = vmul.f32 0.5, %v808_v7  ;;  %v818_v31 = vmul.f32 0.5, %v810_v8 }
 0x1d3   : > { %1063 = verf.f32 %v826_v0  ;;  %v825_v18 = vmul.f32 0.70710677, %v809_v20  ;;  %v827_v21 = vmul.f32 0.70710677, %v811_v23  ;;  %v829_v24 = vmul.f32 0.70710677, %v813_v16 }
 0x1d4   : > { %1065 = verf.f32 %v828_v19  ;;  %v831_v25 = vmul.f32 0.70710677, %v815_v17  ;;  %v820_v34 = vmul.f32 0.5, %v812_v9  ;;  %v822_v39 = vmul.f32 0.5, %v814_v13 }
 0x1d5   : > { %1067 = verf.f32 %v830_v22  ;;  %v817_v43 = vmul.f32 0.5, %v809_v20  ;;  %v819_v47 = vmul.f32 0.5, %v811_v23  ;;  %v821_v50 = vmul.f32 0.5, %v813_v16 }
 0x1d6   : > { %1069 = verf.f32 %v825_v18  ;;  %v823_v53 = vmul.f32 0.5, %v815_v17 }
 0x1d7   : > { %1071 = verf.f32 %v827_v21 }
 0x1d8   : > { %1073 = verf.f32 %v829_v24 }
 0x1d9   : > { %1075 = verf.f32 %v831_v25 }
 0x1df   : > { %v1062_v26 = vpop.eup %1061 }
 0x1e0   : > { %v1064_v27 = vpop.eup %1063  ;;  %v840_v29 = vadd.f32 1.0, %v1062_v26 }
 0x1e1   : > { %v1066_v30 = vpop.eup %1065  ;;  %v842_v32 = vadd.f32 1.0, %v1064_v27 }
 0x1e2   : > { %v1068_v33 = vpop.eup %1067  ;;  %v844_v35 = vadd.f32 1.0, %v1066_v30  ;;  %v848_v36 = vmul.f32 %v840_v29, %v816_v28 }
 0x1e3   : > { %v1070_v37 = vpop.eup %1069  ;;  %v850_v38 = vmul.f32 %v842_v32, %v818_v31  ;;  %v846_v40 = vadd.f32 1.0, %v1068_v33 }
 0x1e4   : > { %v1072_v41 = vpop.eup %1071  ;;  %v852_v42 = vmul.f32 %v844_v35, %v820_v34  ;;  %856 = vst [vmem:[%s242_s7] sm:$0xff] %v848_v36  ;;  %v841_v44 = vadd.f32 1.0, %v1070_v37 }
 0x1e5   : > { %v1074_v45 = vpop.eup %1073  ;;  %858 = vst [vmem:[%s242_s7 + $0x10] sm:$0xff] %v850_v38  ;;  %v854_v46 = vmul.f32 %v846_v40, %v822_v39  ;;  %v843_v48 = vadd.f32 1.0, %v1072_v41 }
 0x1e6   : > { %v1076_v49 = vpop.eup %1075  ;;  %860 = vst [vmem:[%s242_s7 + $0x20] sm:$0xff] %v852_v42  ;;  %v845_v51 = vadd.f32 1.0, %v1074_v45  ;;  %v849_v52 = vmul.f32 %v841_v44, %v817_v43 }
 0x1e7   : > { %862 = vst [vmem:[%s242_s7 + $0x30] sm:$0xff] %v854_v46  ;;  %v847_v54 = vadd.f32 1.0, %v1076_v49  ;;  %v851_v55 = vmul.f32 %v843_v48, %v819_v47 }
 0x1e8   : > { %v853_v56 = vmul.f32 %v845_v51, %v821_v50  ;;  %857 = vst [vmem:[%s242_s7 + $0x8] sm:$0xff] %v849_v52 }
 0x1e9   : > { %v855_v57 = vmul.f32 %v847_v54, %v823_v53  ;;  %859 = vst [vmem:[%s242_s7 + $0x18] sm:$0xff] %v851_v55 }
 0x1ea   : > { %861 = vst [vmem:[%s242_s7 + $0x28] sm:$0xff] %v853_v56 }
 0x1eb   : > { %863 = vst [vmem:[%s242_s7 + $0x38] sm:$0xff] %v855_v57 }
 0x1ec   : > { %1118 = shalt.err (!%p1115_p10)
}
 0x1ed   : > { %s1119_s11 = scalar_lea.hbm %s1452_s13, 1024  ;;  %s1123_s14 = scalar_lea.hbm %s1502_s5, 2048 }
 0x1ee   : > { %p1120_p0 = scmp.ne.s32.totalorder %s1452_s13, %s1119_s11  ;;  %p1124_p1 = scmp.lt.s32.totalorder %s1452_s13, %s1502_s5 }
 0x1ef   : > { %p1125_p3 = scmp.lt.s32.totalorder %s1123_s14, %s1119_s11 }
 0x1f0   : > { %p1121_p2 = pnand %p1120_p0, %p1510_p12 }
 0x1f1   : > { %p1126_p6 = por %p1125_p3, %p1124_p1 }
 0x1f2   : > { %p1122_p9 = pneg %p1121_p2 }
 0x1f4   : > { %p1127_p11 = pnand %p1126_p6, %p1122_p9 }
 0x1f6   : > { %1130 = shalt.err (!%p1127_p11)
}
 0x1f7   : > { %s1178_s6 = smov 256   ;;  %s1179_s9 = smov 16  }
 0x1f8   : > { %1004 = dma.vmem_to_hbm [thread:$0]  (%p1510_p12), %s1454_s8, 1024, %s1452_s13, %s865_s22, %s1178_s6, %s1178_s6, %s1179_s9  }
 0x1f9 PF: > { %s893_s10 = sand.u32 1, %s1157_s18   ;;  %p1511_p13 = scmp.ne.s32.totalorder %s1507_s30, 0 }
 0x1fa   : > { %p1512_p4 = scmp.ge.s32.totalorder %s1169_s21, 2  ;;  %s894_s16 = scalar_lea.sflag [#allocation4], %s893_s10 }
 0x1fc   : > { %p1011_p5 = pnand %p1512_p4, %p1511_p13 }
 0x1fe   : > { %p1012_p7 = pneg %p1011_p5 }
 0x200   : > { %1152 = dma.done.wait (%p1012_p7), %s894_s16, 1024  }
 0x201   : > { %1154 = vsyncadd (%p1012_p7), %s894_s16, 4294966272  ;;  %p18_p8 = scmp.ge.s32.totalorder %s1235_s24, 4   ;;  %s1513_s18 = smov %s1161_s19 }
 0x202   : > { %s1514_s19 = smov %s1165_s20  ;;  %s1515_s20 = smov %s1247_s27 }
 0x203   : > { %s1516_s21 = smov %s1235_s24  ;;  %20 = sbr.rel (!%p18_p8) target bundleno = 5 (0x5), region = 88 }
 0x208   :  { %899 = vsyncpa [#allocation3], 1 }
 0x209   :  { %901 = vsyncpa [#allocation3 + $0x1], 1 }
 0x20a   :  { %902 = vsyncpa [#allocation4], 1 }
 0x20b   :  { %904 = vsyncpa [#allocation4 + $0x1], 1 }

</bundles_post_ra>
